<compile_context>
chip_gen: v6e
topology: v6e:2x2x1
jax: 0.10.0
libtpu: 0.0.40
codegen_flags: <defaults>
</compile_context>

<pallas_src>
import math

import jax
import jax.numpy as jnp
from jax.experimental import pallas as pl
from jax.experimental.pallas import tpu as pltpu

HIDDEN_DIMS = 128
_QPAD = 8  # final-layer rows padded 2 -> 8 (full sublane tile, unmasked stores)


# ---------------------------------------------------------------------------
# Pallas kernel: both twin-Q MLPs fused into 3 matmuls, batch on lane axis.
#   per head: Linear(D,128) -> ReLU -> Linear(128,128) -> ReLU -> Linear(128,1)
# ---------------------------------------------------------------------------
def _twinq_fused_kernel(sa_ref, w1_ref, b1_ref, w2_ref, b2_ref, w3_ref, b3_ref,
                        q_ref):
    x = sa_ref[...]                                        # [D, TB] compute dtype
    h = jnp.dot(w1_ref[...], x,
                preferred_element_type=jnp.float32) + b1_ref[...]
    h = jnp.maximum(h, 0.0)                                # f32 bias + ReLU
    h = jnp.dot(w2_ref[...], h.astype(w2_ref.dtype),
                preferred_element_type=jnp.float32) + b2_ref[...]
    h = jnp.maximum(h, 0.0)
    q = jnp.dot(w3_ref[...], h.astype(w3_ref.dtype),
                preferred_element_type=jnp.float32) + b3_ref[...]
    q_ref[...] = q.astype(q_ref.dtype)                     # [QPAD, TB] lane-dense


def _round_up(x, m):
    return ((x + m - 1) // m) * m


def twinq_forward(sa, packed_params, *, tile_b=512, compute_dtype=jnp.float32):
    """Run both critic heads. sa: [B, D] float32. Returns (q1[B], q2[B])."""
    w1t, b1t, w2t, b2t, w3t, b3t = packed_params
    B, D = sa.shape

    # Batch is the lane axis inside the kernel -> pad to a multiple of 128,
    # then to a multiple of the batch tile.
    Bp = _round_up(max(B, 128), 128)
    tb = _round_up(min(tile_b, Bp), 128)
    Bp = _round_up(Bp, tb)

    sa_t = sa.T.astype(compute_dtype)                      # [D, B]
    if Bp != B:
        sa_t = jnp.pad(sa_t, ((0, 0), (0, Bp - B)))

    # MXU operands in compute_dtype (bf16 halves VMEM/DMA traffic on v6e/v7x);
    # biases stay f32 and are added to the f32 accumulators.
    w1t = w1t.astype(compute_dtype)
    w2t = w2t.astype(compute_dtype)
    w3t = w3t.astype(compute_dtype)

    def resident(shape):
        # Tiny weight/bias arrays: full-array block, same block every step
        # (stays VMEM-resident, no per-step DMA).
        return pl.BlockSpec(shape, lambda i: (0, 0))

    grid = (Bp // tb,)
    q = pl.pallas_call(
        _twinq_fused_kernel,
        out_shape=jax.ShapeDtypeStruct((_QPAD, Bp), jnp.float32),
        grid=grid,
        in_specs=[
            pl.BlockSpec((D, tb), lambda i: (0, i)),       # sa tile, pipelined
            resident(w1t.shape), resident(b1t.shape),
            resident(w2t.shape), resident(b2t.shape),
            resident(w3t.shape), resident(b3t.shape),
        ],
        out_specs=pl.BlockSpec((_QPAD, tb), lambda i: (0, i)),
        compiler_params=pltpu.CompilerParams(
            dimension_semantics=("parallel",),             # v7x: 2 TCs split batch
            vmem_limit_bytes=32 * 1024 * 1024),
    )(sa_t, w1t, b1t, w2t, b2t, w3t, b3t)

    return q[0, :B], q[1, :B]                              # squeeze(-1) per head


# ---------------------------------------------------------------------------
# Parameter init (mirrors the PyTorch module) and twin-head packing.
#   xavier_uniform_(weight, gain=calculate_gain('relu')), bias = 0.01
# Per-head weights are stored [in, out] (transpose of torch's [out, in]).
# ---------------------------------------------------------------------------
def _xavier_uniform(key, fan_in, fan_out, gain):
    a = gain * math.sqrt(6.0 / (fan_in + fan_out))
    return jax.random.uniform(key, (fan_in, fan_out), jnp.float32, -a, a)


def init_params(key, sum_state_dim, sum_action_dim):
    gain = math.sqrt(2.0)  # nn.init.calculate_gain('relu')
    D = sum_state_dim + sum_action_dim
    H = HIDDEN_DIMS
    keys = jax.random.split(key, 6)

    def head(k1, k2, k3):
        w1 = _xavier_uniform(k1, D, H, gain)
        b1 = jnp.full((1, H), 0.01, jnp.float32)
        w2 = _xavier_uniform(k2, H, H, gain)
        b2 = jnp.full((1, H), 0.01, jnp.float32)
        w3 = _xavier_uniform(k3, H, 1, gain)
        b3 = jnp.full((1, 1), 0.01, jnp.float32)
        return (w1, b1, w2, b2, w3, b3)

    return head(*keys[:3]) + head(*keys[3:])


def pack_twinq_params(params):
    """Pack 2x3 Linear layers into fused, kernel-oriented (transposed) weights."""
    (w11, b11, w12, b12, w13, b13,
     w21, b21, w22, b22, w23, b23) = params
    H = w11.shape[1]
    zHH = jnp.zeros((H, H), jnp.float32)
    zH1 = jnp.zeros((H, 1), jnp.float32)

    w1 = jnp.concatenate([w11, w21], axis=1)               # [D, 2H]
    b1 = jnp.concatenate([b11, b21], axis=1)               # [1, 2H]
    w2 = jnp.block([[w12, zHH], [zHH, w22]])               # [2H, 2H]
    b2 = jnp.concatenate([b12, b22], axis=1)               # [1, 2H]
    w3 = jnp.block([[w13, zH1], [zH1, w23]])               # [2H, 2]
    b3 = jnp.concatenate([b13, b23], axis=1)               # [1, 2]

    # Kernel orientation: batch on the lane axis -> every operand transposed,
    # and the 2-row Q head padded to _QPAD rows for full-sublane stores.
    w1t = w1.T                                             # [2H, D]
    b1t = b1.T                                             # [2H, 1]
    w2t = w2.T                                             # [2H, 2H]
    b2t = b2.T                                             # [2H, 1]
    w3t = jnp.zeros((_QPAD, 2 * H), jnp.float32).at[:2, :].set(w3.T)  # [8, 2H]
    b3t = jnp.zeros((_QPAD, 1), jnp.float32).at[:2, :].set(b3.T)      # [8, 1]
    return (w1t, b1t, w2t, b2t, w3t, b3t)


def central_twinq_critic_forward(states, actions, packed_params, *,
                                 tile_b=512, compute_dtype=jnp.float32):
    sa = jnp.concatenate(list(states.values()) + list(actions.values()), axis=-1)
    return twinq_forward(sa, packed_params, tile_b=tile_b,
                         compute_dtype=compute_dtype)


def central_q1(states, actions, packed_params, **kw):
    # Mirrors the module's q1(): both heads are fused so q1 is just row 0.
    return central_twinq_critic_forward(states, actions, packed_params, **kw)[0]


# ---------------------------------------------------------------------------
# Pure-JAX reference from the UNPACKED per-head params (independent check of
# both the packing and the kernel).
# ---------------------------------------------------------------------------
def _reference(states, actions, params):
    sa = jnp.concatenate(list(states.values()) + list(actions.values()), axis=-1)
    (w11, b11, w12, b12, w13, b13,
     w21, b21, w22, b22, w23, b23) = params

    def mlp(w1, b1, w2, b2, w3, b3):
        h = jnp.maximum(sa @ w1 + b1, 0.0)
        h = jnp.maximum(h @ w2 + b2, 0.0)
        return (h @ w3 + b3)[..., 0]

    return (mlp(w11, b11, w12, b12, w13, b13),
            mlp(w21, b21, w22, b22, w23, b23))


if __name__ == "__main__":
    key = jax.random.PRNGKey(0)
    k_param, k_s1, k_s2, k_a1, k_a2 = jax.random.split(key, 5)

    # Two agents: per-agent state dim 6, action dim 2 -> D = 16.
    B = 8
    states = {
        "agent_0": jax.random.normal(k_s1, (B, 6), jnp.float32),
        "agent_1": jax.random.normal(k_s2, (B, 6), jnp.float32),
    }
    actions = {
        "agent_0": jax.random.normal(k_a1, (B, 2), jnp.float32),
        "agent_1": jax.random.normal(k_a2, (B, 2), jnp.float32),
    }
    sum_state_dim, sum_action_dim = 12, 4

    params = init_params(k_param, sum_state_dim, sum_action_dim)
    packed = pack_twinq_params(params)

    # --- f32 path, small batch (single tile) ---
    q1, q2 = central_twinq_critic_forward(states, actions, packed)
    q1 = jax.block_until_ready(q1)
    q2 = jax.block_until_ready(q2)
    r1, r2 = _reference(states, actions, params)
    assert q1.shape == (B,) and q2.shape == (B,)
    assert jnp.allclose(q1, r1, atol=1e-3, rtol=1e-3)
    assert jnp.allclose(q2, r2, atol=1e-3, rtol=1e-3)

    # q1()-only entry point (same fused kernel, row 0)
    q1_only = jax.block_until_ready(central_q1(states, actions, packed))
    assert jnp.allclose(q1_only, r1, atol=1e-3, rtol=1e-3)

    # --- multi-tile batch grid (padding + pipelined tiles) ---
    key2 = jax.random.PRNGKey(1)
    k_b1, k_b2, k_b3, k_b4 = jax.random.split(key2, 4)
    B2 = 300
    states2 = {
        "agent_0": jax.random.normal(k_b1, (B2, 6), jnp.float32),
        "agent_1": jax.random.normal(k_b2, (B2, 6), jnp.float32),
    }
    actions2 = {
        "agent_0": jax.random.normal(k_b3, (B2, 2), jnp.float32),
        "agent_1": jax.random.normal(k_b4, (B2, 2), jnp.float32),
    }
    q1b, q2b = central_twinq_critic_forward(states2, actions2, packed, tile_b=128)
    q1b = jax.block_until_ready(q1b)
    q2b = jax.block_until_ready(q2b)
    r1b, r2b = _reference(states2, actions2, params)
    assert q1b.shape == (B2,) and q2b.shape == (B2,)
    assert jnp.allclose(q1b, r1b, atol=1e-3, rtol=1e-3)
    assert jnp.allclose(q2b, r2b, atol=1e-3, rtol=1e-3)

    # --- bf16 MXU path (full-rate on v6e/v7x): compile/run + sanity check ---
    qb1, qb2 = central_twinq_critic_forward(states, actions, packed,
                                            compute_dtype=jnp.bfloat16)
    qb1 = jax.block_until_ready(qb1)
    qb2 = jax.block_until_ready(qb2)
    assert bool(jnp.all(jnp.isfinite(qb1))) and bool(jnp.all(jnp.isfinite(qb2)))
    assert jnp.allclose(qb1, r1, atol=0.25, rtol=0.25)
    assert jnp.allclose(qb2, r2, atol=0.25, rtol=0.25)

    print("KERNEL_OK")
</pallas_src>

<mosaic_0001>
module attributes {stable_mosaic.version = 11 : i64} {
  func.func @_twinq_fused_kernel(%arg0: i32, %arg1: memref<16x128xf32, #tpu.memory_space<vmem>>, %arg2: memref<256x16xf32, #tpu.memory_space<vmem>>, %arg3: memref<256x1xf32, #tpu.memory_space<vmem>>, %arg4: memref<256x256xf32, #tpu.memory_space<vmem>>, %arg5: memref<256x1xf32, #tpu.memory_space<vmem>>, %arg6: memref<8x256xf32, #tpu.memory_space<vmem>>, %arg7: memref<8x1xf32, #tpu.memory_space<vmem>>, %arg8: memref<8x128xf32, #tpu.memory_space<vmem>>) attributes {dimension_semantics = [#tpu.dimension_semantics<parallel>], iteration_bounds = array<i64: 1>, scalar_prefetch = 0 : i64, scratch_operands = 0 : i64, tpu.core_type = #tpu.core_type<tc>, window_params = [{transform_indices = @transform_0, window_bounds = array<i64: 16, 128>}, {pipeline_mode = #tpu.pipeline_mode<synchronous>, transform_indices = @transform_1, window_bounds = array<i64: 256, 16>}, {pipeline_mode = #tpu.pipeline_mode<synchronous>, transform_indices = @transform_2, window_bounds = array<i64: 256, 1>}, {pipeline_mode = #tpu.pipeline_mode<synchronous>, transform_indices = @transform_3, window_bounds = array<i64: 256, 256>}, {pipeline_mode = #tpu.pipeline_mode<synchronous>, transform_indices = @transform_4, window_bounds = array<i64: 256, 1>}, {pipeline_mode = #tpu.pipeline_mode<synchronous>, transform_indices = @transform_5, window_bounds = array<i64: 8, 256>}, {pipeline_mode = #tpu.pipeline_mode<synchronous>, transform_indices = @transform_6, window_bounds = array<i64: 8, 1>}, {transform_indices = @transform_7, window_bounds = array<i64: 8, 128>}]} {
    %c0 = arith.constant 0 : index
    %c0_0 = arith.constant 0 : index
    %0 = vector.load %arg1[%c0, %c0_0] : memref<16x128xf32, #tpu.memory_space<vmem>>, vector<16x128xf32>
    %c0_1 = arith.constant 0 : index
    %c0_2 = arith.constant 0 : index
    %1 = vector.load %arg2[%c0_1, %c0_2] : memref<256x16xf32, #tpu.memory_space<vmem>>, vector<256x16xf32>
    %cst = arith.constant dense<0.000000e+00> : vector<256x128xf32>
    %2 = tpu.matmul %1, %0, %cst {dimension_numbers = #tpu.dot_dimension_numbers<[1], [0], [0], [1], [0, 0, 1, 1], [], []>} : vector<256x16xf32>, vector<16x128xf32>, vector<256x128xf32> -> vector<256x128xf32>
    %c0_3 = arith.constant 0 : index
    %c0_4 = arith.constant 0 : index
    %3 = vector.load %arg3[%c0_3, %c0_4] : memref<256x1xf32, #tpu.memory_space<vmem>>, vector<256x1xf32>
    %4 = vector.broadcast %3 : vector<256x1xf32> to vector<256x128xf32>
    %5 = arith.addf %2, %4 : vector<256x128xf32>
    %cst_5 = arith.constant 0.000000e+00 : f32
    %6 = vector.broadcast %cst_5 : f32 to vector<256x128xf32>
    %7 = arith.maximumf %5, %6 : vector<256x128xf32>
    %c0_6 = arith.constant 0 : index
    %c0_7 = arith.constant 0 : index
    %8 = vector.load %arg4[%c0_6, %c0_7] : memref<256x256xf32, #tpu.memory_space<vmem>>, vector<256x256xf32>
    %cst_8 = arith.constant dense<0.000000e+00> : vector<256x128xf32>
    %9 = tpu.matmul %8, %7, %cst_8 {dimension_numbers = #tpu.dot_dimension_numbers<[1], [0], [0], [1], [0, 0, 1, 1], [], []>} : vector<256x256xf32>, vector<256x128xf32>, vector<256x128xf32> -> vector<256x128xf32>
    %c0_9 = arith.constant 0 : index
    %c0_10 = arith.constant 0 : index
    %10 = vector.load %arg5[%c0_9, %c0_10] : memref<256x1xf32, #tpu.memory_space<vmem>>, vector<256x1xf32>
    %11 = vector.broadcast %10 : vector<256x1xf32> to vector<256x128xf32>
    %12 = arith.addf %9, %11 : vector<256x128xf32>
    %cst_11 = arith.constant 0.000000e+00 : f32
    %13 = vector.broadcast %cst_11 : f32 to vector<256x128xf32>
    %14 = arith.maximumf %12, %13 : vector<256x128xf32>
    %c0_12 = arith.constant 0 : index
    %c0_13 = arith.constant 0 : index
    %15 = vector.load %arg6[%c0_12, %c0_13] : memref<8x256xf32, #tpu.memory_space<vmem>>, vector<8x256xf32>
    %cst_14 = arith.constant dense<0.000000e+00> : vector<8x128xf32>
    %16 = tpu.matmul %15, %14, %cst_14 {dimension_numbers = #tpu.dot_dimension_numbers<[1], [0], [0], [1], [0, 0, 1, 1], [], []>} : vector<8x256xf32>, vector<256x128xf32>, vector<8x128xf32> -> vector<8x128xf32>
    %c0_15 = arith.constant 0 : index
    %c0_16 = arith.constant 0 : index
    %17 = vector.load %arg7[%c0_15, %c0_16] : memref<8x1xf32, #tpu.memory_space<vmem>>, vector<8x1xf32>
    %18 = vector.broadcast %17 : vector<8x1xf32> to vector<8x128xf32>
    %19 = arith.addf %16, %18 : vector<8x128xf32>
    %c0_17 = arith.constant 0 : index
    %c0_18 = arith.constant 0 : index
    %20 = vector.load %arg8[%c0_17, %c0_18] : memref<8x128xf32, #tpu.memory_space<vmem>>, vector<8x128xf32>
    tpu.vector_store %arg8[%c0_17, %c0_18], %19 {strides = array<i32>} : memref<8x128xf32, #tpu.memory_space<vmem>>, vector<8x128xf32>,
    return
  }
  func.func @transform_0(%arg0: i32) -> (i32, i32) {
    %c0_i32 = arith.constant 0 : i32
    %c0_i32_0 = arith.constant 0 : i32
    return %c0_i32, %arg0 : i32, i32
  }
  func.func @transform_1(%arg0: i32) -> (i32, i32) {
    %c0_i32 = arith.constant 0 : i32
    %c0_i32_0 = arith.constant 0 : i32
    %c0_i32_1 = arith.constant 0 : i32
    return %c0_i32, %c0_i32_0 : i32, i32
  }
  func.func @transform_2(%arg0: i32) -> (i32, i32) {
    %c0_i32 = arith.constant 0 : i32
    %c0_i32_0 = arith.constant 0 : i32
    %c0_i32_1 = arith.constant 0 : i32
    return %c0_i32, %c0_i32_0 : i32, i32
  }
  func.func @transform_3(%arg0: i32) -> (i32, i32) {
    %c0_i32 = arith.constant 0 : i32
    %c0_i32_0 = arith.constant 0 : i32
    %c0_i32_1 = arith.constant 0 : i32
    return %c0_i32, %c0_i32_0 : i32, i32
  }
  func.func @transform_4(%arg0: i32) -> (i32, i32) {
    %c0_i32 = arith.constant 0 : i32
    %c0_i32_0 = arith.constant 0 : i32
    %c0_i32_1 = arith.constant 0 : i32
    return %c0_i32, %c0_i32_0 : i32, i32
  }
  func.func @transform_5(%arg0: i32) -> (i32, i32) {
    %c0_i32 = arith.constant 0 : i32
    %c0_i32_0 = arith.constant 0 : i32
    %c0_i32_1 = arith.constant 0 : i32
    return %c0_i32, %c0_i32_0 : i32, i32
  }
  func.func @transform_6(%arg0: i32) -> (i32, i32) {
    %c0_i32 = arith.constant 0 : i32
    %c0_i32_0 = arith.constant 0 : i32
    %c0_i32_1 = arith.constant 0 : i32
    return %c0_i32, %c0_i32_0 : i32, i32
  }
  func.func @transform_7(%arg0: i32) -> (i32, i32) {
    %c0_i32 = arith.constant 0 : i32
    %c0_i32_0 = arith.constant 0 : i32
    return %c0_i32, %arg0 : i32, i32
  }
}

</mosaic_0001>

<bundles_post_ra>
// kernel: tpu_custom_call.1
= control target key start
LH: loop header
LB: loop body
LE: loop exit
PB: predicated region body
PF: predicated region fallthrough
CT: control target
= control target key end

     0   :  { %v1457_v3 = vmov 0   ;;  %vm253_vm0 = vcmask 130048   ;;  %s2280_s0 = inlined_call_operand.vmem [shape: f32[16,128], index: 0, kind: input, shape index: {}]   ;;  %s2281_s1 = inlined_call_operand.vmem [shape: f32[256,16], index: 1, kind: input, shape index: {}]   ;;  %s2282_s2 = inlined_call_operand.vmem [shape: f32[256,1], index: 2, kind: input, shape index: {}]   ;;  %s2283_s3 = inlined_call_operand.vmem [shape: f32[256,256], index: 3, kind: input, shape index: {}]   ;;  %s2284_s4 = inlined_call_operand.vmem [shape: f32[256,1], index: 4, kind: input, shape index: {}]   ;;  %s2285_s5 = inlined_call_operand.vmem [shape: f32[8,256], index: 5, kind: input, shape index: {}]   ;;  %s2286_s6 = inlined_call_operand.vmem [shape: f32[8,1], index: 6, kind: input, shape index: {}]   ;;  %s2287_s7 = inlined_call_operand.hbm [shape: f32[8,128], index: 7, kind: output, shape index: {}]  }
   0x1   :  { %v28_v0 = vld [vmem:[%s2280_s0 + $0x8] sm:$0xff]  ;;  %v76_v1 = vld [vmem:[%s2282_s2 + $0x78] sm:$0xff]  ;;  %1434 = vset.pattern.permute.xlu1 %v1457_v3  ;;  %1433 = vset.pattern.permute.xlu0 %v1457_v3  ;;  %v27_v4 = vld [vmem:[%s2280_s0] sm:$0xff] }
   0x2   :  { %v74_v2 = vld [vmem:[%s2282_s2 + $0x68] sm:$0xff]  ;;  %v29_v5 = vld [vmem:[%s2281_s1] sm:$0xff]  ;;  %1314 = vmatprep.subr.mxu0 %v28_v0  ;;  %170 = vperm.xlu0 %1433, %v76_v1   ;;  %v75_v7 = vld [vmem:[%s2282_s2 + $0x70] sm:$0xff] }
   0x3   :  { %160 = vperm.xlu1 %1434, %v74_v2   ;;  %1315 = vmatpush3.msra.mxu0 %v28_v0  ;;  %v30_v6 = vld [vmem:[%s2281_s1 + $0x8] sm:$0xff]  ;;  %v73_v8 = vld [vmem:[%s2282_s2 + $0x60] sm:$0xff]  ;;  %v31_v9 = vld [vmem:[%s2281_s1 + $0x10] sm:$0xff] }
   0x4   :  { %1316 = vmatprep.subr.mxu0 %v27_v4  ;;  %1318 = vmatprep.mubr.msk.f32.mxu0 %vm253_vm0, %v29_v5  ;;  %v32_v10 = vld [vmem:[%s2281_s1 + $0x18] sm:$0xff]  ;;  %v71_v12 = vld [vmem:[%s2282_s2 + $0x50] sm:$0xff]  ;;  %v33_v13 = vld [vmem:[%s2281_s1 + $0x20] sm:$0xff] }
   0x5   :  { %1317 = vmatpush3.msra.mxu0 %v27_v4  ;;  %v72_v11 = vld [vmem:[%s2282_s2 + $0x58] sm:$0xff]  ;;  %v34_v14 = vld [vmem:[%s2281_s1 + $0x28] sm:$0xff]  ;;  %v69_v16 = vld [vmem:[%s2282_s2 + $0x40] sm:$0xff] }
   0x6   :  { %1319 = vmatmul.mubr.msk.f32.vlgmr.msra.gmra.mxu0 %vm253_vm0, %v30_v6  ;;  %165 = vperm.xlu0 %1433, %v75_v7   ;;  %v70_v15 = vld [vmem:[%s2282_s2 + $0x48] sm:$0xff]  ;;  %v35_v17 = vld [vmem:[%s2281_s1 + $0x30] sm:$0xff]  ;;  %v36_v18 = vld [vmem:[%s2281_s1 + $0x38] sm:$0xff] }
   0x7   :  { %155 = vperm.xlu1 %1434, %v73_v8   ;;  %1321 = vmatprep.mubr.msk.f32.mxu0 %vm253_vm0, %v31_v9  ;;  %v68_v19 = vld [vmem:[%s2282_s2 + $0x38] sm:$0xff]  ;;  %v67_v20 = vld [vmem:[%s2282_s2 + $0x30] sm:$0xff]  ;;  %v37_v21 = vld [vmem:[%s2281_s1 + $0x40] sm:$0xff] }
   0x8   :  { %v38_v22 = vld [vmem:[%s2281_s1 + $0x48] sm:$0xff]  ;;  %v65_v24 = vld [vmem:[%s2282_s2 + $0x20] sm:$0xff]  ;;  %v39_v25 = vld [vmem:[%s2281_s1 + $0x50] sm:$0xff] }
   0x9   :  { %v66_v23 = vld [vmem:[%s2282_s2 + $0x28] sm:$0xff]  ;;  %v40_v26 = vld [vmem:[%s2281_s1 + $0x58] sm:$0xff]  ;;  %v63_v28 = vld [vmem:[%s2282_s2 + $0x10] sm:$0xff] }
   0xa   :  { %1322 = vmatmul.mubr.msk.f32.gmra.mxu0 %vm253_vm0, %v32_v10  ;;  %150 = vperm.xlu0 %1433, %v72_v11   ;;  %v64_v27 = vld [vmem:[%s2282_s2 + $0x18] sm:$0xff]  ;;  %v41_v29 = vld [vmem:[%s2281_s1 + $0x60] sm:$0xff]  ;;  %v42_v30 = vld [vmem:[%s2281_s1 + $0x68] sm:$0xff] }
   0xb   :  { %145 = vperm.xlu1 %1434, %v71_v12   ;;  %1324 = vmatprep.mubr.msk.f32.mxu0 %vm253_vm0, %v33_v13  ;;  %v62_v31 = vld [vmem:[%s2282_s2 + $0x8] sm:$0xff]  ;;  %v61_v32 = vld [vmem:[%s2282_s2] sm:$0xff]  ;;  %v43_v33 = vld [vmem:[%s2281_s1 + $0x70] sm:$0xff] }
   0xc   :  { %v44_v34 = vld [vmem:[%s2281_s1 + $0x78] sm:$0xff]  ;;  %v91_v36 = vld [vmem:[%s2282_s2 + $0xf0] sm:$0xff]  ;;  %v45_v37 = vld [vmem:[%s2281_s1 + $0x80] sm:$0xff] }
   0xd   :  { %v92_v35 = vld [vmem:[%s2282_s2 + $0xf8] sm:$0xff] }
   0xe   :  { %1325 = vmatmul.mubr.msk.f32.gmra.mxu0 %vm253_vm0, %v34_v14  ;;  %140 = vperm.xlu0 %1433, %v70_v15  }
   0xf   :  { %135 = vperm.xlu1 %1434, %v69_v16   ;;  %1327 = vmatprep.mubr.msk.f32.mxu0 %vm253_vm0, %v35_v17 }
  0x12   :  { %1328 = vmatmul.mubr.msk.f32.gmra.mxu0 %vm253_vm0, %v36_v18  ;;  %130 = vperm.xlu0 %1433, %v68_v19  }
  0x13   :  { %125 = vperm.xlu1 %1434, %v67_v20   ;;  %1330 = vmatprep.mubr.msk.f32.mxu0 %vm253_vm0, %v37_v21 }
  0x16   :  { %1331 = vmatmul.mubr.msk.f32.gmra.mxu0 %vm253_vm0, %v38_v22  ;;  %120 = vperm.xlu0 %1433, %v66_v23  }
  0x17   :  { %115 = vperm.xlu1 %1434, %v65_v24   ;;  %1333 = vmatprep.mubr.msk.f32.mxu0 %vm253_vm0, %v39_v25 }
  0x1a   :  { %1334 = vmatmul.mubr.msk.f32.gmra.mxu0 %vm253_vm0, %v40_v26  ;;  %110 = vperm.xlu0 %1433, %v64_v27  }
  0x1b   :  { %105 = vperm.xlu1 %1434, %v63_v28   ;;  %1336 = vmatprep.mubr.msk.f32.mxu0 %vm253_vm0, %v41_v29 }
  0x1e   :  { %1337 = vmatmul.mubr.msk.f32.gmra.mxu0 %vm253_vm0, %v42_v30  ;;  %100 = vperm.xlu0 %1433, %v62_v31  }
  0x1f   :  { %95 = vperm.xlu1 %1434, %v61_v32   ;;  %1339 = vmatprep.mubr.msk.f32.mxu0 %vm253_vm0, %v43_v33 }
  0x20   :  { %12 = vsyncpa [#allocation3], 0  ;;  %v46_v38 = vld [vmem:[%s2281_s1 + $0x88] sm:$0xff]  ;;  %v89_v40 = vld [vmem:[%s2282_s2 + $0xe0] sm:$0xff]  ;;  %v1458_v23 = vmov 0.0   ;;  %s1459_s16 = smov [#allocation2]  }
  0x21   :  { %v90_v39 = vld [vmem:[%s2282_s2 + $0xe8] sm:$0xff]  ;;  %v47_v41 = vld [vmem:[%s2281_s1 + $0x90] sm:$0xff]  ;;  %v48_v42 = vld [vmem:[%s2281_s1 + $0x98] sm:$0xff]  ;;  %1366 = vmatprep.subr.mxu1 %v1458_v23  ;;  %863 = vmatprep.subr.mxu0 %v1458_v23  ;;  %s1205_s17 = sshll.u32 %s1459_s16, 4  ;;  %s1206_s17 = int_to_ptr.vmem [resolvable:$true] %s1205_s17 }
  0x22   :  { %1340 = vmatmul.mubr.msk.f32.gmra.mxu0 %vm253_vm0, %v44_v34  ;;  %250 = vperm.xlu0 %1433, %v92_v35   ;;  %v88_v43 = vld [vmem:[%s2282_s2 + $0xd8] sm:$0xff]  ;;  %v87_v44 = vld [vmem:[%s2282_s2 + $0xd0] sm:$0xff]  ;;  %v49_v45 = vld [vmem:[%s2281_s1 + $0xa0] sm:$0xff]  ;;  %s1435_s18 = scalar_lea.vmem %s1206_s17, 128  ;;  %p1440_p1 = scmp.lt.s32.totalorder %s1206_s17, %s1206_s17 }
  0x23   :  { %245 = vperm.xlu1 %1434, %v91_v36   ;;  %1342 = vmatprep.mubr.msk.f32.mxu0 %vm253_vm0, %v45_v37  ;;  %v50_v46 = vld [vmem:[%s2281_s1 + $0xa8] sm:$0xff]  ;;  %v85_v48 = vld [vmem:[%s2282_s2 + $0xc0] sm:$0xff]  ;;  %v51_v49 = vld [vmem:[%s2281_s1 + $0xb0] sm:$0xff]  ;;  %p1436_p0 = scmp.ne.s32.totalorder %s1206_s17, %s1435_s18  ;;  %p1441_p2 = scmp.lt.s32.totalorder %s1435_s18, %s1435_s18 }
  0x24   :  { %v86_v47 = vld [vmem:[%s2282_s2 + $0xc8] sm:$0xff]  ;;  %v52_v50 = vld [vmem:[%s2281_s1 + $0xb8] sm:$0xff]  ;;  %v83_v52 = vld [vmem:[%s2282_s2 + $0xb0] sm:$0xff] }
  0x25   :  { %v84_v51 = vld [vmem:[%s2282_s2 + $0xb8] sm:$0xff]  ;;  %v53_v53 = vld [vmem:[%s2281_s1 + $0xc0] sm:$0xff]  ;;  %v54_v54 = vld [vmem:[%s2281_s1 + $0xc8] sm:$0xff]  ;;  %p1442_p3 = por %p1441_p2, %p1440_p1 }
  0x26   :  { %1343 = vmatmul.mubr.msk.f32.gmra.mxu0 %vm253_vm0, %v46_v38  ;;  %240 = vperm.xlu0 %1433, %v90_v39   ;;  %v82_v55 = vld [vmem:[%s2282_s2 + $0xa8] sm:$0xff]  ;;  %v81_v56 = vld [vmem:[%s2282_s2 + $0xa0] sm:$0xff]  ;;  %v55_v57 = vld [vmem:[%s2281_s1 + $0xd0] sm:$0xff] }
  0x27   :  { %235 = vperm.xlu1 %1434, %v89_v40   ;;  %1345 = vmatprep.mubr.msk.f32.mxu0 %vm253_vm0, %v47_v41  ;;  %v56_v58 = vld [vmem:[%s2281_s1 + $0xd8] sm:$0xff]  ;;  %v79_v60 = vld [vmem:[%s2282_s2 + $0x90] sm:$0xff]  ;;  %v57_v61 = vld [vmem:[%s2281_s1 + $0xe0] sm:$0xff]  ;;  %p1443_p4 = pnand %p1442_p3, %p1436_p0 }
  0x28   :  { %v80_v59 = vld [vmem:[%s2282_s2 + $0x98] sm:$0xff]  ;;  %v58_v62 = vld [vmem:[%s2281_s1 + $0xe8] sm:$0xff]  ;;  %v77_v0 = vld [vmem:[%s2282_s2 + $0x80] sm:$0xff] }
  0x29   :  { %v78_v63 = vld [vmem:[%s2282_s2 + $0x88] sm:$0xff]  ;;  %v59_v1 = vld [vmem:[%s2281_s1 + $0xf0] sm:$0xff]  ;;  %v60_v2 = vld [vmem:[%s2281_s1 + $0xf8] sm:$0xff] }
  0x2a   :  { %1346 = vmatmul.mubr.msk.f32.gmra.mxu0 %vm253_vm0, %v48_v42  ;;  %230 = vperm.xlu0 %1433, %v88_v43   ;;  %v702_v3 = vld [vmem:[%s2284_s4 + $0xf8] sm:$0xff]  ;;  %v701_v5 = vld [vmem:[%s2284_s4 + $0xf0] sm:$0xff]  ;;  %v700_v7 = vld [vmem:[%s2284_s4 + $0xe8] sm:$0xff] }
  0x2b   :  { %225 = vperm.xlu1 %1434, %v87_v44   ;;  %1348 = vmatprep.mubr.msk.f32.mxu0 %vm253_vm0, %v49_v45  ;;  %v686_v4 = vld [vmem:[%s2284_s4 + $0x78] sm:$0xff]  ;;  %v685_v6 = vld [vmem:[%s2284_s4 + $0x70] sm:$0xff]  ;;  %v684_v8 = vld [vmem:[%s2284_s4 + $0x68] sm:$0xff] }
  0x2c   :  { %v699_v9 = vld [vmem:[%s2284_s4 + $0xe0] sm:$0xff]  ;;  %v698_v11 = vld [vmem:[%s2284_s4 + $0xd8] sm:$0xff]  ;;  %v697_v13 = vld [vmem:[%s2284_s4 + $0xd0] sm:$0xff] }
  0x2d   :  { %v683_v10 = vld [vmem:[%s2284_s4 + $0x60] sm:$0xff]  ;;  %v682_v12 = vld [vmem:[%s2284_s4 + $0x58] sm:$0xff]  ;;  %v681_v14 = vld [vmem:[%s2284_s4 + $0x50] sm:$0xff] }
  0x2e   :  { %1349 = vmatmul.mubr.msk.f32.gmra.mxu0 %vm253_vm0, %v50_v46  ;;  %220 = vperm.xlu0 %1433, %v86_v47   ;;  %v696_v15 = vld [vmem:[%s2284_s4 + $0xc8] sm:$0xff]  ;;  %v695_v17 = vld [vmem:[%s2284_s4 + $0xc0] sm:$0xff]  ;;  %v694_v19 = vld [vmem:[%s2284_s4 + $0xb8] sm:$0xff] }
  0x2f   :  { %215 = vperm.xlu1 %1434, %v85_v48   ;;  %1351 = vmatprep.mubr.msk.f32.mxu0 %vm253_vm0, %v51_v49  ;;  %v680_v16 = vld [vmem:[%s2284_s4 + $0x48] sm:$0xff]  ;;  %v679_v18 = vld [vmem:[%s2284_s4 + $0x40] sm:$0xff]  ;;  %v678_v20 = vld [vmem:[%s2284_s4 + $0x38] sm:$0xff] }
  0x30   :  { %v693_v21 = vld [vmem:[%s2284_s4 + $0xb0] sm:$0xff]  ;;  %v692_v24 = vld [vmem:[%s2284_s4 + $0xa8] sm:$0xff]  ;;  %v691_v26 = vld [vmem:[%s2284_s4 + $0xa0] sm:$0xff] }
  0x31   :  { %v677_v22 = vld [vmem:[%s2284_s4 + $0x30] sm:$0xff]  ;;  %v676_v25 = vld [vmem:[%s2284_s4 + $0x28] sm:$0xff]  ;;  %v675_v27 = vld [vmem:[%s2284_s4 + $0x20] sm:$0xff] }
  0x32   :  { %1352 = vmatmul.mubr.msk.f32.gmra.mxu0 %vm253_vm0, %v52_v50  ;;  %210 = vperm.xlu0 %1433, %v84_v51   ;;  %v690_v28 = vld [vmem:[%s2284_s4 + $0x98] sm:$0xff]  ;;  %v689_v30 = vld [vmem:[%s2284_s4 + $0x90] sm:$0xff]  ;;  %v688_v32 = vld [vmem:[%s2284_s4 + $0x88] sm:$0xff] }
  0x33   :  { %205 = vperm.xlu1 %1434, %v83_v52   ;;  %1354 = vmatprep.mubr.msk.f32.mxu0 %vm253_vm0, %v53_v53  ;;  %v674_v29 = vld [vmem:[%s2284_s4 + $0x18] sm:$0xff]  ;;  %v673_v31 = vld [vmem:[%s2284_s4 + $0x10] sm:$0xff]  ;;  %v672_v33 = vld [vmem:[%s2284_s4 + $0x8] sm:$0xff] }
  0x34   :  { %v687_v34 = vld [vmem:[%s2284_s4 + $0x80] sm:$0xff]  ;;  %v608_v37 = vld [vmem:[%s2283_s3 + $0x8] sm:$0xff]  ;;  %v638_v38 = vld [vmem:[%s2283_s3 + $0xf8] sm:$0xff] }
  0x35   :  { %v671_v35 = vld [vmem:[%s2284_s4] sm:$0xff]  ;;  %1002 = vmatprep.mubr.f32.mxu1 %v638_v38 }
  0x36   :  { %1355 = vmatmul.mubr.msk.f32.gmra.mxu0 %vm253_vm0, %v54_v54  ;;  %200 = vperm.xlu0 %1433, %v82_v55   ;;  %v1122_v36 = vld [vmem:[%s2286_s6] sm:$0xff] }
  0x37   :  { %195 = vperm.xlu1 %1434, %v81_v56   ;;  %1357 = vmatprep.mubr.msk.f32.mxu0 %vm253_vm0, %v55_v57 }
  0x3a   :  { %1358 = vmatmul.mubr.msk.f32.gmra.mxu0 %vm253_vm0, %v56_v58  ;;  %190 = vperm.xlu0 %1433, %v80_v59  }
  0x3b   :  { %185 = vperm.xlu1 %1434, %v79_v60   ;;  %1360 = vmatprep.mubr.msk.f32.mxu0 %vm253_vm0, %v57_v61 }
  0x3e   :  { %1361 = vmatmul.mubr.msk.f32.gmra.mxu0 %vm253_vm0, %v58_v62  ;;  %180 = vperm.xlu0 %1433, %v78_v63  }
  0x3f   :  { %175 = vperm.xlu1 %1434, %v77_v0   ;;  %1363 = vmatprep.mubr.msk.f32.mxu0 %vm253_vm0, %v59_v1 }
  0x42   :  { %1364 = vmatmul.mubr.msk.f32.gmra.mxu0 %vm253_vm0, %v60_v2  ;;  %860 = vperm.xlu0 %1433, %v702_v3  }
  0x43   :  { %780 = vperm.xlu1 %1434, %v686_v4   ;;  %927 = vmatprep.mubr.f32.mxu0 %v608_v37 }
  0x46   :  { %855 = vperm.xlu0 %1433, %v701_v5  }
  0x47   :  { %775 = vperm.xlu1 %1434, %v685_v6  }
  0x4a   :  { %850 = vperm.xlu0 %1433, %v700_v7  }
  0x4b   :  { %770 = vperm.xlu1 %1434, %v684_v8  }
  0x4e   :  { %845 = vperm.xlu0 %1433, %v699_v9  }
  0x4f   :  { %765 = vperm.xlu1 %1434, %v683_v10  }
  0x52   :  { %840 = vperm.xlu0 %1433, %v698_v11  }
  0x53   :  { %760 = vperm.xlu1 %1434, %v682_v12  }
  0x56   :  { %835 = vperm.xlu0 %1433, %v697_v13  }
  0x57   :  { %755 = vperm.xlu1 %1434, %v681_v14  }
  0x5a   :  { %830 = vperm.xlu0 %1433, %v696_v15  }
  0x5b   :  { %750 = vperm.xlu1 %1434, %v680_v16  }
  0x5e   :  { %825 = vperm.xlu0 %1433, %v695_v17  }
  0x5f   :  { %745 = vperm.xlu1 %1434, %v679_v18  }
  0x62   :  { %820 = vperm.xlu0 %1433, %v694_v19  }
  0x63   :  { %740 = vperm.xlu1 %1434, %v678_v20  }
  0x66   :  { %815 = vperm.xlu0 %1433, %v693_v21  }
  0x67   :  { %735 = vperm.xlu1 %1434, %v677_v22  }
  0x6a   :  { %810 = vperm.xlu0 %1433, %v692_v24  }
  0x6b   :  { %730 = vperm.xlu1 %1434, %v676_v25  }
  0x6e   :  { %805 = vperm.xlu0 %1433, %v691_v26  }
  0x6f   :  { %725 = vperm.xlu1 %1434, %v675_v27  }
  0x72   :  { %800 = vperm.xlu0 %1433, %v690_v28  }
  0x73   :  { %720 = vperm.xlu1 %1434, %v674_v29  }
  0x76   :  { %795 = vperm.xlu0 %1433, %v689_v30  }
  0x77   :  { %715 = vperm.xlu1 %1434, %v673_v31  }
  0x7a   :  { %790 = vperm.xlu0 %1433, %v688_v32  }
  0x7b   :  { %710 = vperm.xlu1 %1434, %v672_v33  }
  0x7d   :  { %v171_v39 = vpop.permute.xlu0 %170 }
  0x7e   :  { %785 = vperm.xlu0 %1433, %v687_v34   ;;  %v161_v40 = vpop.permute.xlu1 %160 }
  0x7f   :  { %705 = vperm.xlu1 %1434, %v671_v35  }
  0x81   :  { %v166_v42 = vpop.permute.xlu0 %165 }
  0x82   :  { %1125 = vperm.xlu0 %1433, %v1122_v36   ;;  %v156_v44 = vpop.permute.xlu1 %155 }
  0x85   :  { %v151_v47 = vpop.permute.xlu0 %150 }
  0x86   :  { %v146_v49 = vpop.permute.xlu1 %145 }
  0x89   :  { %v141_v52 = vpop.permute.xlu0 %140 }
  0x8a   :  { %v136_v54 = vpop.permute.xlu1 %135 }
  0x8d   :  { %v131_v57 = vpop.permute.xlu0 %130 }
  0x8e   :  { %v126_v59 = vpop.permute.xlu1 %125 }
  0x91   :  { %v1851_v62 = vpop.permute.xlu0 %120 }
  0x92   :  { %v1853_v0 = vpop.permute.xlu1 %115 }
  0x95   :  { %v1855_v7 = vpop.permute.xlu0 %110 }
  0x96   :  { %v1859_v11 = vpop.permute.xlu1 %105 }
  0x99   :  { %v1869_v18 = vpop.permute.xlu0 %100 }
  0x9a   :  { %v1875_v22 = vpop.permute.xlu1 %95 }
  0x9d   :  { %v1885_v30 = vpop.permute.xlu0 %250 }
  0x9e   :  { %v1892_v34 = vpop.permute.xlu1 %245 }
  0xc6   :  { %v1837_v41 = vpop.f32.mrf.mxu0 }
  0xc8   :  { %v1839_v43 = vpop.f32.mrf.mxu0 }
  0xca   :  { %v1841_v45 = vpop.f32.mrf.mxu0 }
  0xcc   :  { %v1843_v46 = vpop.f32.mrf.mxu0 }
  0xce   :  { %v1845_v48 = vpop.f32.mrf.mxu0 }
  0xcf   :  { %v442_v36 = vadd.f32 %v1845_v48, %v1851_v62 }
  0xd0   :  { %v1847_v50 = vpop.f32.mrf.mxu0 }
  0xd1   :  { %v580_v48 = vmax.f32 %v442_v36, 0.0 }
  0xd2   :  { %v1329_v51 = vpop.f32.mrf.mxu0 }
  0xd3   :  { %v452_v28 = vadd.f32 %v1329_v51, %v131_v57 }
  0xd4   :  { %v1849_v53 = vpop.f32.mrf.mxu0 }
  0xd5   :  { %v447_v32 = vadd.f32 %v1849_v53, %v126_v59  ;;  %v582_v37 = vmax.f32 %v452_v28, 0.0 }
  0xd6   :  { %v1332_v55 = vpop.f32.mrf.mxu0 }
  0xd7   :  { %v462_v20 = vadd.f32 %v1332_v55, %v141_v52 }
  0xd8   :  { %v456_v56 = vpop.f32.mrf.mxu0 }
  0xd9   :  { %v457_v25 = vadd.f32 %v456_v56, %v136_v54  ;;  %v584_v29 = vmax.f32 %v462_v20, 0.0 }
  0xda   :  { %v1335_v58 = vpop.f32.mrf.mxu0 }
  0xdb   :  { %v472_v13 = vadd.f32 %v1335_v58, %v151_v47  ;;  %v583_v33 = vmax.f32 %v457_v25, 0.0  ;;  %v432_v47 = vadd.f32 %v1841_v45, %v1855_v7  ;;  %v422_v45 = vadd.f32 %v1837_v41, %v1869_v18 }
  0xdc   :  { %v466_v60 = vpop.f32.mrf.mxu0 }
  0xdd   :  { %v467_v16 = vadd.f32 %v466_v60, %v146_v49  ;;  %v586_v21 = vmax.f32 %v472_v13, 0.0  ;;  %v236_v49 = vpop.permute.xlu1 %235  ;;  %v578_v54 = vmax.f32 %v432_v47, 0.0  ;;  %v576_v41 = vmax.f32 %v422_v45, 0.0  ;;  %v610_v47 = vld [vmem:[%s2283_s3 + $0x18] sm:$0xff] }
  0xde   :  { %v1338_v61 = vpop.f32.mrf.mxu0  ;;  %v614_v45 = vld [vmem:[%s2283_s3 + $0x38] sm:$0xff] }
  0xdf   :  { %v482_v4 = vadd.f32 %v1338_v61, %v161_v40  ;;  %v585_v26 = vmax.f32 %v467_v16, 0.0  ;;  %v581_v40 = vmax.f32 %v447_v32, 0.0 }
  0xe0   :  { %v476_v63 = vpop.f32.mrf.mxu0 }
  0xe1   :  { %v477_v9 = vadd.f32 %v476_v63, %v156_v44  ;;  %v588_v14 = vmax.f32 %v482_v4, 0.0  ;;  %v226_v58 = vpop.permute.xlu1 %225 }
  0xe2   :  { %v1341_v1 = vpop.f32.mrf.mxu0 }
  0xe3   :  { %v492_v2 = vadd.f32 %v1341_v1, %v171_v39  ;;  %v587_v17 = vmax.f32 %v477_v9, 0.0  ;;  %v437_v39 = vadd.f32 %v1847_v50, %v1853_v0  ;;  %v427_v50 = vadd.f32 %v1843_v46, %v1859_v11 }
  0xe4   :  { %v486_v3 = vpop.f32.mrf.mxu0  ;;  %v417_v46 = vadd.f32 %v1839_v43, %v1875_v22 }
  0xe5   :  { %v590_v5 = vmax.f32 %v492_v2, 0.0  ;;  %v487_v6 = vadd.f32 %v486_v3, %v166_v42  ;;  %v241_v42 = vpop.permute.xlu0 %240  ;;  %v579_v52 = vmax.f32 %v437_v39, 0.0  ;;  %v577_v57 = vmax.f32 %v427_v50, 0.0  ;;  %v216_v3 = vpop.permute.xlu1 %215  ;;  %v642_v50 = vld [vmem:[%s2283_s3 + $0x118] sm:$0xff] }
  0xe6   :  { %v1857_v8 = vpop.f32.mrf.mxu0  ;;  %v575_v61 = vmax.f32 %v417_v46, 0.0  ;;  %v616_v46 = vld [vmem:[%s2283_s3 + $0x48] sm:$0xff] }
  0xe7   :  { %v589_v10 = vmax.f32 %v487_v6, 0.0  ;;  %864 = vmatpush1.msra.mxu0 %v590_v5  ;;  %1398 = vmatpush1.msra.mxu1 %v590_v5 }
  0xe8   :  { %v1861_v12 = vpop.f32.mrf.mxu0  ;;  %865 = vmatprep.subr.mxu0 %v1458_v23  ;;  %1367 = vmatprep.subr.mxu1 %v1458_v23 }
  0xe9   :  { %866 = vmatpush1.msra.mxu0 %v589_v10  ;;  %1399 = vmatpush1.msra.mxu1 %v589_v10  ;;  %v231_v55 = vpop.permute.xlu0 %230  ;;  %v206_v13 = vpop.permute.xlu1 %205 }
  0xea   :  { %v1865_v15 = vpop.f32.mrf.mxu0  ;;  %867 = vmatprep.subr.mxu0 %v1458_v23  ;;  %1368 = vmatprep.subr.mxu1 %v1458_v23 }
  0xeb   :  { %868 = vmatpush1.msra.mxu0 %v588_v14  ;;  %1400 = vmatpush1.msra.mxu1 %v588_v14 }
  0xec   :  { %v1871_v19 = vpop.f32.mrf.mxu0  ;;  %869 = vmatprep.subr.mxu0 %v1458_v23  ;;  %1369 = vmatprep.subr.mxu1 %v1458_v23 }
  0xed   :  { %870 = vmatpush1.msra.mxu0 %v587_v17  ;;  %1401 = vmatpush1.msra.mxu1 %v587_v17  ;;  %v221_v62 = vpop.permute.xlu0 %220  ;;  %v196_v25 = vpop.permute.xlu1 %195 }
  0xee   :  { %v1877_v24 = vpop.f32.mrf.mxu0  ;;  %871 = vmatprep.subr.mxu0 %v1458_v23  ;;  %1370 = vmatprep.subr.mxu1 %v1458_v23 }
  0xef   :  { %872 = vmatpush1.msra.mxu0 %v586_v21  ;;  %1402 = vmatpush1.msra.mxu1 %v586_v21 }
  0xf0   :  { %v1881_v27 = vpop.f32.mrf.mxu0  ;;  %873 = vmatprep.subr.mxu0 %v1458_v23  ;;  %1371 = vmatprep.subr.mxu1 %v1458_v23 }
  0xf1   :  { %874 = vmatpush1.msra.mxu0 %v585_v26  ;;  %1403 = vmatpush1.msra.mxu1 %v585_v26  ;;  %v211_v9 = vpop.permute.xlu0 %210  ;;  %v517_v32 = vadd.f32 %v1881_v27, %v196_v25  ;;  %v660_v25 = vld [vmem:[%s2283_s3 + $0x1a8] sm:$0xff] }
  0xf2   :  { %v1887_v31 = vpop.f32.mrf.mxu0  ;;  %875 = vmatprep.subr.mxu0 %v1458_v23  ;;  %1372 = vmatprep.subr.mxu1 %v1458_v23 }
  0xf3   :  { %876 = vmatpush1.msra.mxu0 %v584_v29  ;;  %1404 = vmatpush1.msra.mxu1 %v584_v29  ;;  %v532_v21 = vadd.f32 %v1887_v31, %v211_v9  ;;  %v595_v27 = vmax.f32 %v517_v32, 0.0  ;;  %v623_v9 = vld [vmem:[%s2283_s3 + $0x80] sm:$0xff]  ;;  %v661_v32 = vld [vmem:[%s2283_s3 + $0x1b0] sm:$0xff] }
  0xf4   :  { %v1894_v35 = vpop.f32.mrf.mxu0  ;;  %877 = vmatprep.subr.mxu0 %v1458_v23  ;;  %1373 = vmatprep.subr.mxu1 %v1458_v23 }
  0xf5   :  { %878 = vmatpush1.msra.mxu0 %v583_v33  ;;  %1405 = vmatpush1.msra.mxu1 %v583_v33  ;;  %v201_v20 = vpop.permute.xlu0 %200  ;;  %v527_v26 = vadd.f32 %v1894_v35, %v206_v13  ;;  %v656_v13 = vld [vmem:[%s2283_s3 + $0x188] sm:$0xff] }
  0xf6   :  { %v1900_v38 = vpop.f32.mrf.mxu0  ;;  %879 = vmatprep.subr.mxu0 %v1458_v23  ;;  %1374 = vmatprep.subr.mxu1 %v1458_v23  ;;  %v522_v29 = vadd.f32 %v1877_v24, %v201_v20  ;;  %v627_v20 = vld [vmem:[%s2283_s3 + $0xa0] sm:$0xff] }
  0xf7   :  { %880 = vmatpush1.msra.mxu0 %v582_v37  ;;  %1406 = vmatpush1.msra.mxu1 %v582_v37  ;;  %v542_v14 = vadd.f32 %v1900_v38, %v221_v62  ;;  %v597_v33 = vmax.f32 %v527_v26, 0.0  ;;  %v620_v62 = vld [vmem:[%s2283_s3 + $0x68] sm:$0xff]  ;;  %v629_v26 = vld [vmem:[%s2283_s3 + $0xb0] sm:$0xff] }
  0xf8   :  { %v1906_v44 = vpop.f32.mrf.mxu0  ;;  %881 = vmatprep.subr.mxu0 %v1458_v23  ;;  %1375 = vmatprep.subr.mxu1 %v1458_v23  ;;  %v596_v35 = vmax.f32 %v522_v29, 0.0  ;;  %v632_v29 = vld [vmem:[%s2283_s3 + $0xc8] sm:$0xff] }
  0xf9   :  { %882 = vmatpush1.msra.mxu0 %v581_v40  ;;  %1407 = vmatpush1.msra.mxu1 %v581_v40  ;;  %v537_v17 = vadd.f32 %v1906_v44, %v216_v3  ;;  %v600_v22 = vmax.f32 %v542_v14, 0.0  ;;  %v191_v31 = vpop.permute.xlu0 %190  ;;  %v637_v44 = vld [vmem:[%s2283_s3 + $0xf0] sm:$0xff]  ;;  %v652_v3 = vld [vmem:[%s2283_s3 + $0x168] sm:$0xff] }
  0xfa   :  { %v1359_v51 = vpop.f32.mrf.mxu0  ;;  %883 = vmatprep.subr.mxu0 %v1458_v23  ;;  %1376 = vmatprep.subr.mxu1 %v1458_v23  ;;  %v512_v24 = vadd.f32 %v1865_v15, %v191_v31  ;;  %v625_v14 = vld [vmem:[%s2283_s3 + $0x90] sm:$0xff]  ;;  %v631_v31 = vld [vmem:[%s2283_s3 + $0xc0] sm:$0xff] }
  0xfb   :  { %884 = vmatpush1.msra.mxu0 %v580_v48  ;;  %1408 = vmatpush1.msra.mxu1 %v580_v48  ;;  %v552_v6 = vadd.f32 %v1359_v51, %v231_v55  ;;  %v599_v28 = vmax.f32 %v537_v17, 0.0  ;;  %v640_v48 = vld [vmem:[%s2283_s3 + $0x108] sm:$0xff]  ;;  %v613_v55 = vld [vmem:[%s2283_s3 + $0x30] sm:$0xff] }
  0xfc   :  { %v546_v53 = vpop.f32.mrf.mxu0  ;;  %885 = vmatprep.subr.mxu0 %v1458_v23  ;;  %1377 = vmatprep.subr.mxu1 %v1458_v23  ;;  %v594_v15 = vmax.f32 %v512_v24, 0.0  ;;  %v612_v51 = vld [vmem:[%s2283_s3 + $0x28] sm:$0xff]  ;;  %v633_v24 = vld [vmem:[%s2283_s3 + $0xd0] sm:$0xff] }
  0xfd   :  { %886 = vmatpush1.msra.mxu0 %v579_v52  ;;  %1409 = vmatpush1.msra.mxu1 %v579_v52  ;;  %v547_v10 = vadd.f32 %v546_v53, %v226_v58  ;;  %v602_v16 = vmax.f32 %v552_v6, 0.0  ;;  %v181_v37 = vpop.permute.xlu0 %180  ;;  %v611_v52 = vld [vmem:[%s2283_s3 + $0x20] sm:$0xff]  ;;  %v641_v53 = vld [vmem:[%s2283_s3 + $0x110] sm:$0xff]  ;;  %v624_v6 = vld [vmem:[%s2283_s3 + $0x88] sm:$0xff] }
  0xfe   :  { %v1362_v56 = vpop.f32.mrf.mxu0  ;;  %887 = vmatprep.subr.mxu0 %v1458_v23  ;;  %1378 = vmatprep.subr.mxu1 %v1458_v23  ;;  %v502_v38 = vadd.f32 %v1857_v8, %v181_v37  ;;  %v615_v58 = vld [vmem:[%s2283_s3 + $0x40] sm:$0xff]  ;;  %v628_v17 = vld [vmem:[%s2283_s3 + $0xa8] sm:$0xff] }
  0xff   :  { %888 = vmatpush1.msra.mxu0 %v578_v54  ;;  %1410 = vmatpush1.msra.mxu1 %v578_v54  ;;  %v562_v0 = vadd.f32 %v1362_v56, %v241_v42  ;;  %v601_v18 = vmax.f32 %v547_v10, 0.0  ;;  %v644_v54 = vld [vmem:[%s2283_s3 + $0x128] sm:$0xff]  ;;  %v643_v56 = vld [vmem:[%s2283_s3 + $0x120] sm:$0xff]  ;;  %v653_v10 = vld [vmem:[%s2283_s3 + $0x170] sm:$0xff] }
 0x100   :  { %v556_v59 = vpop.f32.mrf.mxu0  ;;  %889 = vmatprep.subr.mxu0 %v1458_v23  ;;  %1379 = vmatprep.subr.mxu1 %v1458_v23  ;;  %v592_v42 = vmax.f32 %v502_v38, 0.0  ;;  %v635_v37 = vld [vmem:[%s2283_s3 + $0xe0] sm:$0xff]  ;;  %v665_v38 = vld [vmem:[%s2283_s3 + $0x1d0] sm:$0xff] }
 0x101   :  { %890 = vmatpush1.msra.mxu0 %v577_v57  ;;  %1411 = vmatpush1.msra.mxu1 %v577_v57  ;;  %v557_v4 = vadd.f32 %v556_v59, %v236_v49  ;;  %v604_v7 = vmax.f32 %v562_v0, 0.0  ;;  %v609_v49 = vld [vmem:[%s2283_s3 + $0x10] sm:$0xff]  ;;  %v646_v57 = vld [vmem:[%s2283_s3 + $0x138] sm:$0xff]  ;;  %v619_v0 = vld [vmem:[%s2283_s3 + $0x60] sm:$0xff] }
 0x102   :  { %v1365_v60 = vpop.f32.mrf.mxu0  ;;  %891 = vmatprep.subr.mxu0 %v1458_v23  ;;  %1380 = vmatprep.subr.mxu1 %v1458_v23  ;;  %v645_v59 = vld [vmem:[%s2283_s3 + $0x130] sm:$0xff] }
 0x103   :  { %v572_v43 = vadd.f32 %v1365_v60, %v1885_v30  ;;  %892 = vmatpush1.msra.mxu0 %v576_v41  ;;  %1412 = vmatpush1.msra.mxu1 %v576_v41  ;;  %v603_v11 = vmax.f32 %v557_v4, 0.0  ;;  %v598_v30 = vmax.f32 %v532_v21, 0.0  ;;  %v618_v41 = vld [vmem:[%s2283_s3 + $0x58] sm:$0xff]  ;;  %v648_v60 = vld [vmem:[%s2283_s3 + $0x148] sm:$0xff]  ;;  %v621_v4 = vld [vmem:[%s2283_s3 + $0x70] sm:$0xff] }
 0x104   :  { %v566_v63 = vpop.f32.mrf.mxu0  ;;  %893 = vmatprep.subr.mxu0 %v1458_v23  ;;  %1381 = vmatprep.subr.mxu1 %v1458_v23  ;;  %v657_v21 = vld [vmem:[%s2283_s3 + $0x190] sm:$0xff] }
 0x105   :  { %v606_v1 = vmax.f32 %v572_v43, 0.0  ;;  %v567_v2 = vadd.f32 %v566_v63, %v1892_v34  ;;  %894 = vmatpush1.msra.mxu0 %v575_v61  ;;  %1413 = vmatpush1.msra.mxu1 %v575_v61  ;;  %v186_v34 = vpop.permute.xlu1 %185  ;;  %v617_v61 = vld [vmem:[%s2283_s3 + $0x50] sm:$0xff]  ;;  %v647_v43 = vld [vmem:[%s2283_s3 + $0x140] sm:$0xff]  ;;  %v650_v63 = vld [vmem:[%s2283_s3 + $0x158] sm:$0xff] }
 0x106   :  { %895 = vmatprep.subr.mxu0 %v1458_v23  ;;  %1382 = vmatprep.subr.mxu1 %v1458_v23  ;;  %v507_v36 = vadd.f32 %v1871_v19, %v186_v34  ;;  %v664_v34 = vld [vmem:[%s2283_s3 + $0x1c8] sm:$0xff] }
 0x107   :  { %v605_v5 = vmax.f32 %v567_v2, 0.0  ;;  %896 = vmatpush2.msra.mxu0 %v606_v1  ;;  %1414 = vmatpush2.msra.mxu1 %v606_v1  ;;  %v649_v1 = vld [vmem:[%s2283_s3 + $0x150] sm:$0xff]  ;;  %v622_v2 = vld [vmem:[%s2283_s3 + $0x78] sm:$0xff] }
 0x108   :  { %897 = vmatprep.subr.mxu0 %v1458_v23  ;;  %1383 = vmatprep.subr.mxu1 %v1458_v23  ;;  %v593_v40 = vmax.f32 %v507_v36, 0.0  ;;  %v636_v36 = vld [vmem:[%s2283_s3 + $0xe8] sm:$0xff] }
 0x109   :  { %898 = vmatpush2.msra.mxu0 %v605_v5  ;;  %1415 = vmatpush2.msra.mxu1 %v605_v5  ;;  %v176_v39 = vpop.permute.xlu1 %175  ;;  %v651_v5 = vld [vmem:[%s2283_s3 + $0x160] sm:$0xff] }
 0x10a   :  { %899 = vmatprep.subr.mxu0 %v1458_v23  ;;  %1384 = vmatprep.subr.mxu1 %v1458_v23  ;;  %v497_v19 = vadd.f32 %v1861_v12, %v176_v39  ;;  %v607_v12 = vld [vmem:[%s2283_s3] sm:$0xff] }
 0x10b   :  { %900 = vmatpush2.msra.mxu0 %v604_v7  ;;  %1416 = vmatpush2.msra.mxu1 %v604_v7  ;;  %v654_v7 = vld [vmem:[%s2283_s3 + $0x178] sm:$0xff]  ;;  %v667_v39 = vld [vmem:[%s2283_s3 + $0x1e0] sm:$0xff] }
 0x10c   :  { %901 = vmatprep.subr.mxu0 %v1458_v23  ;;  %1385 = vmatprep.subr.mxu1 %v1458_v23  ;;  %v591_v8 = vmax.f32 %v497_v19, 0.0  ;;  %v670_v19 = vld [vmem:[%s2283_s3 + $0x1f8] sm:$0xff] }
 0x10d   :  { %902 = vmatpush2.msra.mxu0 %v603_v11  ;;  %1417 = vmatpush2.msra.mxu1 %v603_v11  ;;  %v626_v11 = vld [vmem:[%s2283_s3 + $0x98] sm:$0xff] }
 0x10e   :  { %903 = vmatprep.subr.mxu0 %v1458_v23  ;;  %1386 = vmatprep.subr.mxu1 %v1458_v23 }
 0x10f   :  { %904 = vmatpush2.msra.mxu0 %v602_v16  ;;  %1418 = vmatpush2.msra.mxu1 %v602_v16  ;;  %v655_v16 = vld [vmem:[%s2283_s3 + $0x180] sm:$0xff] }
 0x110   :  { %905 = vmatprep.subr.mxu0 %v1458_v23  ;;  %1387 = vmatprep.subr.mxu1 %v1458_v23 }
 0x111   :  { %906 = vmatpush2.msra.mxu0 %v601_v18  ;;  %1419 = vmatpush2.msra.mxu1 %v601_v18  ;;  %v658_v18 = vld [vmem:[%s2283_s3 + $0x198] sm:$0xff] }
 0x112   :  { %907 = vmatprep.subr.mxu0 %v1458_v23  ;;  %1388 = vmatprep.subr.mxu1 %v1458_v23 }
 0x113   :  { %908 = vmatpush2.msra.mxu0 %v600_v22  ;;  %1420 = vmatpush2.msra.mxu1 %v600_v22  ;;  %v630_v22 = vld [vmem:[%s2283_s3 + $0xb8] sm:$0xff] }
 0x114   :  { %909 = vmatprep.subr.mxu0 %v1458_v23  ;;  %1389 = vmatprep.subr.mxu1 %v1458_v23 }
 0x115   :  { %910 = vmatpush2.msra.mxu0 %v599_v28  ;;  %1421 = vmatpush2.msra.mxu1 %v599_v28  ;;  %v659_v28 = vld [vmem:[%s2283_s3 + $0x1a0] sm:$0xff] }
 0x116   :  { %911 = vmatprep.subr.mxu0 %v1458_v23  ;;  %1390 = vmatprep.subr.mxu1 %v1458_v23 }
 0x117   :  { %912 = vmatpush2.msra.mxu0 %v598_v30  ;;  %1422 = vmatpush2.msra.mxu1 %v598_v30  ;;  %v662_v30 = vld [vmem:[%s2283_s3 + $0x1b8] sm:$0xff] }
 0x118   :  { %913 = vmatprep.subr.mxu0 %v1458_v23  ;;  %1391 = vmatprep.subr.mxu1 %v1458_v23 }
 0x119   :  { %914 = vmatpush2.msra.mxu0 %v597_v33  ;;  %1423 = vmatpush2.msra.mxu1 %v597_v33  ;;  %v634_v33 = vld [vmem:[%s2283_s3 + $0xd8] sm:$0xff] }
 0x11a   :  { %915 = vmatprep.subr.mxu0 %v1458_v23  ;;  %1392 = vmatprep.subr.mxu1 %v1458_v23 }
 0x11b   :  { %916 = vmatpush2.msra.mxu0 %v596_v35  ;;  %1424 = vmatpush2.msra.mxu1 %v596_v35  ;;  %v663_v35 = vld [vmem:[%s2283_s3 + $0x1c0] sm:$0xff] }
 0x11c   :  { %917 = vmatprep.subr.mxu0 %v1458_v23  ;;  %1393 = vmatprep.subr.mxu1 %v1458_v23 }
 0x11d   :  { %918 = vmatpush2.msra.mxu0 %v595_v27  ;;  %1425 = vmatpush2.msra.mxu1 %v595_v27  ;;  %v666_v27 = vld [vmem:[%s2283_s3 + $0x1d8] sm:$0xff] }
 0x11e   :  { %919 = vmatprep.subr.mxu0 %v1458_v23  ;;  %1394 = vmatprep.subr.mxu1 %v1458_v23 }
 0x11f   :  { %920 = vmatpush2.msra.mxu0 %v594_v15  ;;  %1426 = vmatpush2.msra.mxu1 %v594_v15  ;;  %v668_v15 = vld [vmem:[%s2283_s3 + $0x1e8] sm:$0xff] }
 0x120   :  { %921 = vmatprep.subr.mxu0 %v1458_v23  ;;  %1395 = vmatprep.subr.mxu1 %v1458_v23 }
 0x121   :  { %922 = vmatpush2.msra.mxu0 %v593_v40  ;;  %1427 = vmatpush2.msra.mxu1 %v593_v40  ;;  %v669_v40 = vld [vmem:[%s2283_s3 + $0x1f0] sm:$0xff] }
 0x122   :  { %923 = vmatprep.subr.mxu0 %v1458_v23  ;;  %1396 = vmatprep.subr.mxu1 %v1458_v23 }
 0x123   :  { %924 = vmatpush2.msra.mxu0 %v592_v42  ;;  %1428 = vmatpush2.msra.mxu1 %v592_v42  ;;  %v1121_v42 = vld [vmem:[%s2285_s5 + $0x8] sm:$0xff] }
 0x124   :  { %925 = vmatprep.subr.mxu0 %v1458_v23  ;;  %1397 = vmatprep.subr.mxu1 %v1458_v23  ;;  %v639_v23 = vld [vmem:[%s2283_s3 + $0x100] sm:$0xff] }
 0x125   :  { %926 = vmatpush2.msra.mxu0 %v591_v8  ;;  %1429 = vmatpush2.msra.mxu1 %v591_v8 }
 0x126   :  { %928 = vmatmul.mubr.f32.vlgmr.msra.gmra.mxu0 %v607_v12  ;;  %1003 = vmatmul.mubr.f32.vlgmr.msra.gmra.mxu1 %v637_v44  ;;  %v2167_v44 = vpop.permute.xlu0 %860 }
 0x127   :  { %932 = vmatprep.mubr.f32.mxu0 %v610_v47  ;;  %1007 = vmatprep.mubr.f32.mxu1 %v640_v48 }
 0x12a   :  { %933 = vmatmul.mubr.f32.gmra.mxu0 %v609_v49  ;;  %1008 = vmatmul.mubr.f32.gmra.mxu1 %v639_v23  ;;  %v2169_v49 = vpop.permute.xlu1 %780 }
 0x12b   :  { %937 = vmatprep.mubr.f32.mxu0 %v612_v51  ;;  %1012 = vmatprep.mubr.f32.mxu1 %v642_v50 }
 0x12e   :  { %938 = vmatmul.mubr.f32.gmra.mxu0 %v611_v52  ;;  %1013 = vmatmul.mubr.f32.gmra.mxu1 %v641_v53  ;;  %v2175_v53 = vpop.permute.xlu0 %855 }
 0x12f   :  { %942 = vmatprep.mubr.f32.mxu0 %v614_v45  ;;  %1017 = vmatprep.mubr.f32.mxu1 %v644_v54 }
 0x132   :  { %943 = vmatmul.mubr.f32.gmra.mxu0 %v613_v55  ;;  %1018 = vmatmul.mubr.f32.gmra.mxu1 %v643_v56  ;;  %v2181_v55 = vpop.permute.xlu1 %775 }
 0x133   :  { %947 = vmatprep.mubr.f32.mxu0 %v616_v46  ;;  %1022 = vmatprep.mubr.f32.mxu1 %v646_v57 }
 0x136   :  { %948 = vmatmul.mubr.f32.gmra.mxu0 %v615_v58  ;;  %1023 = vmatmul.mubr.f32.gmra.mxu1 %v645_v59  ;;  %v2187_v59 = vpop.permute.xlu0 %850 }
 0x137   :  { %952 = vmatprep.mubr.f32.mxu0 %v618_v41  ;;  %1027 = vmatprep.mubr.f32.mxu1 %v648_v60 }
 0x13a   :  { %953 = vmatmul.mubr.f32.gmra.mxu0 %v617_v61  ;;  %1028 = vmatmul.mubr.f32.gmra.mxu1 %v647_v43  ;;  %v2189_v61 = vpop.permute.xlu1 %770 }
 0x13b   :  { %957 = vmatprep.mubr.f32.mxu0 %v620_v62  ;;  %1032 = vmatprep.mubr.f32.mxu1 %v650_v63 }
 0x13e   :  { %958 = vmatmul.mubr.f32.gmra.mxu0 %v619_v0  ;;  %1033 = vmatmul.mubr.f32.gmra.mxu1 %v649_v1  ;;  %v2195_v1 = vpop.permute.xlu0 %845 }
 0x13f   :  { %962 = vmatprep.mubr.f32.mxu0 %v622_v2  ;;  %1037 = vmatprep.mubr.f32.mxu1 %v652_v3 }
 0x142   :  { %963 = vmatmul.mubr.f32.gmra.mxu0 %v621_v4  ;;  %1038 = vmatmul.mubr.f32.gmra.mxu1 %v651_v5  ;;  %v2201_v4 = vpop.permute.xlu1 %765 }
 0x143   :  { %967 = vmatprep.mubr.f32.mxu0 %v624_v6  ;;  %1042 = vmatprep.mubr.f32.mxu1 %v654_v7 }
 0x146   :  { %968 = vmatmul.mubr.f32.gmra.mxu0 %v623_v9  ;;  %1043 = vmatmul.mubr.f32.gmra.mxu1 %v653_v10  ;;  %v2207_v10 = vpop.permute.xlu0 %840 }
 0x147   :  { %972 = vmatprep.mubr.f32.mxu0 %v626_v11  ;;  %1047 = vmatprep.mubr.f32.mxu1 %v656_v13 }
 0x14a   :  { %973 = vmatmul.mubr.f32.gmra.mxu0 %v625_v14  ;;  %1048 = vmatmul.mubr.f32.gmra.mxu1 %v655_v16  ;;  %v2209_v14 = vpop.permute.xlu1 %760 }
 0x14b   :  { %977 = vmatprep.mubr.f32.mxu0 %v628_v17  ;;  %1052 = vmatprep.mubr.f32.mxu1 %v658_v18 }
 0x14e   :  { %978 = vmatmul.mubr.f32.gmra.mxu0 %v627_v20  ;;  %1053 = vmatmul.mubr.f32.gmra.mxu1 %v657_v21  ;;  %v2215_v21 = vpop.permute.xlu0 %835 }
 0x14f   :  { %982 = vmatprep.mubr.f32.mxu0 %v630_v22  ;;  %1057 = vmatprep.mubr.f32.mxu1 %v660_v25 }
 0x152   :  { %983 = vmatmul.mubr.f32.gmra.mxu0 %v629_v26  ;;  %1058 = vmatmul.mubr.f32.gmra.mxu1 %v659_v28  ;;  %v2221_v26 = vpop.permute.xlu1 %755 }
 0x153   :  { %987 = vmatprep.mubr.f32.mxu0 %v632_v29  ;;  %1062 = vmatprep.mubr.f32.mxu1 %v662_v30 }
 0x156   :  { %988 = vmatmul.mubr.f32.gmra.mxu0 %v631_v31  ;;  %1063 = vmatmul.mubr.f32.gmra.mxu1 %v661_v32  ;;  %v2227_v32 = vpop.permute.xlu0 %830 }
 0x157   :  { %992 = vmatprep.mubr.f32.mxu0 %v634_v33  ;;  %1067 = vmatprep.mubr.f32.mxu1 %v664_v34 }
 0x15a   :  { %993 = vmatmul.mubr.f32.gmra.mxu0 %v633_v24  ;;  %1068 = vmatmul.mubr.f32.gmra.mxu1 %v663_v35  ;;  %v2229_v24 = vpop.permute.xlu1 %750 }
 0x15b   :  { %997 = vmatprep.mubr.f32.mxu0 %v636_v36  ;;  %1072 = vmatprep.mubr.f32.mxu1 %v666_v27 }
 0x15e   :  { %998 = vmatmul.mubr.f32.gmra.mxu0 %v635_v37  ;;  %1073 = vmatmul.mubr.f32.gmra.mxu1 %v665_v38  ;;  %v2231_v38 = vpop.permute.xlu0 %825 }
 0x15f   :  { %1077 = vmatprep.mubr.f32.mxu1 %v668_v15  ;;  %1192 = vmatprep.mubr.f32.mxu0 %v1121_v42 }
 0x162   :  { %1078 = vmatmul.mubr.f32.gmra.mxu1 %v667_v39 }
 0x163   :  { %1082 = vmatprep.mubr.f32.mxu1 %v670_v19  ;;  %v2233_v19 = vpop.permute.xlu1 %745 }
 0x166   :  { %1083 = vmatmul.mubr.f32.gmra.mxu1 %v669_v40 }
 0x1e6   :  { %v2163_v8 = vpop.f32.mrf.mxu0  ;;  %v2165_v12 = vpop.f32.mrf.mxu1 }
 0x1e7   :  { %2288 = vst [vmem:[#allocation5_spill] sm:$0xff] %v2163_v8 }
 0x1e8   :  { %v931_v47 = vpop.f32.mrf.mxu0  ;;  %v1006_v48 = vpop.f32.mrf.mxu1 }
 0x1ea   :  { %v2171_v23 = vpop.f32.mrf.mxu0  ;;  %v2173_v51 = vpop.f32.mrf.mxu1 }
 0x1eb   :  { %2289 = vst [vmem:[#allocation6_spill] sm:$0xff] %v2171_v23  ;;  %2290 = vst [vmem:[#allocation7_spill] sm:$0xff] %v2173_v51 }
 0x1ec   :  { %v936_v50 = vpop.f32.mrf.mxu0  ;;  %v1011_v52 = vpop.f32.mrf.mxu1 }
 0x1ed   :  { %v821_v50 = vpop.permute.xlu0 %820 }
 0x1ee   :  { %v2177_v45 = vpop.f32.mrf.mxu0  ;;  %v2179_v54 = vpop.f32.mrf.mxu1 }
 0x1f0   :  { %v941_v56 = vpop.f32.mrf.mxu0  ;;  %v1016_v46 = vpop.f32.mrf.mxu1 }
 0x1f1   :  { %v2235_v46 = vpop.permute.xlu1 %740 }
 0x1f2   :  { %v2183_v57 = vpop.f32.mrf.mxu0  ;;  %v2185_v58 = vpop.f32.mrf.mxu1 }
 0x1f4   :  { %v946_v41 = vpop.f32.mrf.mxu0  ;;  %v1021_v60 = vpop.f32.mrf.mxu1 }
 0x1f6   :  { %v2191_v43 = vpop.f32.mrf.mxu0  ;;  %v2193_v62 = vpop.f32.mrf.mxu1 }
 0x1f8   :  { %v951_v63 = vpop.f32.mrf.mxu0  ;;  %v1026_v0 = vpop.f32.mrf.mxu1 }
 0x1fa   :  { %v2197_v2 = vpop.f32.mrf.mxu0  ;;  %v2199_v3 = vpop.f32.mrf.mxu1 }
 0x1fc   :  { %v956_v5 = vpop.f32.mrf.mxu0  ;;  %v1031_v6 = vpop.f32.mrf.mxu1 }
 0x1fd   :  { %v816_v5 = vpop.permute.xlu0 %815 }
 0x1fe   :  { %v2203_v7 = vpop.f32.mrf.mxu0  ;;  %v2205_v9 = vpop.f32.mrf.mxu1 }
 0x200   :  { %v961_v11 = vpop.f32.mrf.mxu0  ;;  %v1036_v13 = vpop.f32.mrf.mxu1 }
 0x201   :  { %v736_v13 = vpop.permute.xlu1 %735 }
 0x202   :  { %v2211_v16 = vpop.f32.mrf.mxu0  ;;  %v2213_v17 = vpop.f32.mrf.mxu1 }
 0x204   :  { %v966_v18 = vpop.f32.mrf.mxu0  ;;  %v1041_v20 = vpop.f32.mrf.mxu1 }
 0x206   :  { %v2217_v22 = vpop.f32.mrf.mxu0  ;;  %v2219_v25 = vpop.f32.mrf.mxu1 }
 0x208   :  { %v971_v28 = vpop.f32.mrf.mxu0  ;;  %v1046_v29 = vpop.f32.mrf.mxu1 }
 0x209   :  { %v811_v29 = vpop.permute.xlu0 %810 }
 0x20a   :  { %v2223_v30 = vpop.f32.mrf.mxu0  ;;  %v2225_v31 = vpop.f32.mrf.mxu1 }
 0x20c   :  { %v976_v33 = vpop.f32.mrf.mxu0  ;;  %v1051_v34 = vpop.f32.mrf.mxu1 }
 0x20d   :  { %v731_v34 = vpop.permute.xlu1 %730 }
 0x20e   :  { %v979_v35 = vpop.f32.mrf.mxu0  ;;  %v1054_v36 = vpop.f32.mrf.mxu1 }
 0x210   :  { %v981_v27 = vpop.f32.mrf.mxu0  ;;  %v1056_v37 = vpop.f32.mrf.mxu1 }
 0x211   :  { %v1005_v27 = vadd.f32 %v2165_v12, %v2169_v49 }
 0x212   :  { %v984_v15 = vpop.f32.mrf.mxu0  ;;  %v1059_v39 = vpop.f32.mrf.mxu1 }
 0x214   :  { %v986_v40 = vpop.f32.mrf.mxu0  ;;  %v1061_v42 = vpop.f32.mrf.mxu1 }
 0x216   :  { %v989_v47 = vpop.f32.mrf.mxu0  ;;  %v1064_v48 = vpop.f32.mrf.mxu1 }
 0x217   :  { %v990_v12 = vadd.f32 %v989_v47, %v2201_v4  ;;  %v1055_v47 = vadd.f32 %v1054_v36, %v2227_v32 }
 0x218   :  { %v991_v52 = vpop.f32.mrf.mxu0  ;;  %v1066_v56 = vpop.f32.mrf.mxu1 }
 0x219   :  { %v1113_v32 = vmax.f32 %v1055_v47, 0.0 }
 0x21a   :  { %v994_v41 = vpop.f32.mrf.mxu0  ;;  %v1069_v60 = vpop.f32.mrf.mxu1 }
 0x21b   :  { %v995_v8 = vadd.f32 %v994_v41, %v2189_v61  ;;  %v1070_v51 = vadd.f32 %v1069_v60, %v2195_v1  ;;  %v980_v1 = vadd.f32 %v979_v35, %v2221_v26  ;;  %v1100_v60 = vmax.f32 %v990_v12, 0.0 }
 0x21c   :  { %v996_v63 = vpop.f32.mrf.mxu0  ;;  %v1071_v0 = vpop.f32.mrf.mxu1  ;;  %v1045_v26 = vadd.f32 %v2219_v25, %v821_v50 }
 0x21d   :  { %v1116_v61 = vmax.f32 %v1070_v51, 0.0 }
 0x21e   :  { %v999_v6 = vpop.f32.mrf.mxu0  ;;  %v1074_v11 = vpop.f32.mrf.mxu1  ;;  %v1111_v25 = vmax.f32 %v1045_v26, 0.0 }
 0x21f   :  { %v1000_v52 = vadd.f32 %v999_v6, %v2181_v55  ;;  %v1075_v63 = vadd.f32 %v1074_v11, %v2187_v59  ;;  %v985_v55 = vadd.f32 %v984_v15, %v2209_v14  ;;  %v1101_v59 = vmax.f32 %v995_v8, 0.0 }
 0x220   :  { %v1076_v18 = vpop.f32.mrf.mxu1  ;;  %v1001_v20 = vpop.f32.mrf.mxu0  ;;  %v1060_v6 = vadd.f32 %v1059_v39, %v2215_v21  ;;  %v1050_v8 = vadd.f32 %v2225_v31, %v2231_v38  ;;  %v970_v14 = vadd.f32 %v2217_v22, %v2233_v19  ;;  %v1098_v21 = vmax.f32 %v980_v1, 0.0 }
 0x221   :  { %v806_v18 = vpop.permute.xlu0 %805  ;;  %v1103_v20 = vmax.f32 %v1005_v27, 0.0  ;;  %v1102_v49 = vmax.f32 %v1000_v52, 0.0  ;;  %v1040_v31 = vadd.f32 %v2213_v17, %v816_v5  ;;  %v960_v15 = vadd.f32 %v2203_v7, %v736_v13 }
 0x222   :  { %v1079_v28 = vpop.f32.mrf.mxu1  ;;  %v1114_v51 = vmax.f32 %v1060_v6, 0.0  ;;  %v1112_v38 = vmax.f32 %v1050_v8, 0.0  ;;  %v1096_v22 = vmax.f32 %v970_v14, 0.0  ;;  %v1035_v39 = vadd.f32 %v2205_v9, %v811_v29 }
 0x223   :  { %v1080_v40 = vadd.f32 %v1079_v28, %v2175_v53  ;;  %v1117_v53 = vmax.f32 %v1075_v63, 0.0  ;;  %v955_v19 = vadd.f32 %v2197_v2, %v731_v34  ;;  %v1110_v50 = vmax.f32 %v1040_v31, 0.0 }
 0x224   :  { %v1081_v33 = vpop.f32.mrf.mxu1  ;;  %v1094_v5 = vmax.f32 %v960_v15, 0.0  ;;  %v1109_v28 = vmax.f32 %v1035_v39, 0.0 }
 0x225   :  { %v726_v33 = vpop.permute.xlu1 %725  ;;  %v1118_v23 = vmax.f32 %v1080_v40, 0.0  ;;  %v801_v41 = vpop.permute.xlu0 %800  ;;  %v1093_v29 = vmax.f32 %v955_v19, 0.0 }
 0x226   :  { %v1084_v37 = vpop.f32.mrf.mxu1  ;;  %v950_v17 = vadd.f32 %v2191_v43, %v726_v33  ;;  %v1025_v13 = vadd.f32 %v2193_v62, %v801_v41  ;;  %v2291_v62 = vld [vmem:[#allocation6_spill] sm:$0xff] }
 0x227   :  { %v1085_v42 = vadd.f32 %v1084_v37, %v2167_v44  ;;  %v1065_v44 = vadd.f32 %v1064_v48, %v2207_v10  ;;  %v1099_v10 = vmax.f32 %v985_v55, 0.0 }
 0x228   :  { %v1086_v56 = vpop.f32.mrf.mxu1  ;;  %v1092_v27 = vmax.f32 %v950_v17, 0.0  ;;  %v1107_v37 = vmax.f32 %v1025_v13, 0.0 }
 0x229   :  { %v1119_v0 = vmax.f32 %v1085_v42, 0.0  ;;  %v721_v4 = vpop.permute.xlu1 %720  ;;  %v1115_v11 = vmax.f32 %v1065_v44, 0.0  ;;  %v796_v35 = vpop.permute.xlu0 %795  ;;  %v2292_v56 = vld [vmem:[#allocation7_spill] sm:$0xff] }
 0x22a   :  { %v945_v9 = vadd.f32 %v2183_v57, %v721_v4  ;;  %v1020_v2 = vadd.f32 %v2185_v58, %v796_v35  ;;  %v2293_v58 = vld [vmem:[#allocation5_spill] sm:$0xff] }
 0x22b   :  { %1279 = vmatprep.subr.mxu0 %v1119_v0 }
 0x22c   :  { %1280 = vmatpush3.msra.mxu0 %v1103_v20  ;;  %v1091_v52 = vmax.f32 %v945_v9, 0.0  ;;  %v1106_v0 = vmax.f32 %v1020_v2, 0.0 }
 0x22d   :  { %1281 = vmatprep.subr.mxu0 %v1118_v23  ;;  %v975_v23 = vadd.f32 %v2223_v30, %v2229_v24  ;;  %v965_v30 = vadd.f32 %v2211_v16, %v2235_v46  ;;  %v716_v36 = vpop.permute.xlu1 %715  ;;  %v1030_v16 = vadd.f32 %v2199_v3, %v806_v18  ;;  %v791_v46 = vpop.permute.xlu0 %790 }
 0x22e   :  { %1282 = vmatpush3.msra.mxu0 %v1102_v49  ;;  %v940_v3 = vadd.f32 %v2177_v45, %v716_v36  ;;  %v1015_v43 = vadd.f32 %v2179_v54, %v791_v46  ;;  %v1120_v49 = vld [vmem:[%s2285_s5] sm:$0xff] }
 0x22f   :  { %1283 = vmatprep.subr.mxu0 %v1117_v53  ;;  %v1097_v24 = vmax.f32 %v975_v23, 0.0  ;;  %v1095_v48 = vmax.f32 %v965_v30, 0.0  ;;  %v1108_v34 = vmax.f32 %v1030_v16, 0.0 }
 0x230   :  { %1284 = vmatpush3.msra.mxu0 %v1101_v59  ;;  %v1090_v20 = vmax.f32 %v940_v3, 0.0  ;;  %v1105_v45 = vmax.f32 %v1015_v43, 0.0 }
 0x231   :  { %1285 = vmatprep.subr.mxu0 %v1116_v61  ;;  %v711_v7 = vpop.permute.xlu1 %710  ;;  %v786_v40 = vpop.permute.xlu0 %785 }
 0x232   :  { %1286 = vmatpush3.msra.mxu0 %v1100_v60  ;;  %v935_v42 = vadd.f32 %v2291_v62, %v711_v7  ;;  %v1010_v63 = vadd.f32 %v2292_v56, %v786_v40 }
 0x233   :  { %1287 = vmatprep.subr.mxu0 %v1115_v11 }
 0x234   :  { %1288 = vmatpush3.msra.mxu0 %v1099_v10  ;;  %v1089_v33 = vmax.f32 %v935_v42, 0.0  ;;  %v1104_v54 = vmax.f32 %v1010_v63, 0.0 }
 0x235   :  { %1289 = vmatprep.subr.mxu0 %v1114_v51  ;;  %v706_v57 = vpop.permute.xlu1 %705  ;;  %v1126_v59 = vpop.permute.xlu0 %1125 }
 0x236   :  { %1290 = vmatpush3.msra.mxu0 %v1098_v21  ;;  %v930_v18 = vadd.f32 %v2293_v58, %v706_v57 }
 0x237   :  { %1291 = vmatprep.subr.mxu0 %v1113_v32 }
 0x238   :  { %1292 = vmatpush3.msra.mxu0 %v1097_v24  ;;  %v1088_v12 = vmax.f32 %v930_v18, 0.0 }
 0x239   :  { %1293 = vmatprep.subr.mxu0 %v1112_v38 }
 0x23a   :  { %1294 = vmatpush3.msra.mxu0 %v1096_v22 }
 0x23b   :  { %1295 = vmatprep.subr.mxu0 %v1111_v25 }
 0x23c   :  { %1296 = vmatpush3.msra.mxu0 %v1095_v48 }
 0x23d   :  { %1297 = vmatprep.subr.mxu0 %v1110_v50 }
 0x23e   :  { %1298 = vmatpush3.msra.mxu0 %v1094_v5 }
 0x23f   :  { %1299 = vmatprep.subr.mxu0 %v1109_v28 }
 0x240   :  { %1300 = vmatpush3.msra.mxu0 %v1093_v29 }
 0x241   :  { %1301 = vmatprep.subr.mxu0 %v1108_v34 }
 0x242   :  { %1302 = vmatpush3.msra.mxu0 %v1092_v27 }
 0x243   :  { %1303 = vmatprep.subr.mxu0 %v1107_v37 }
 0x244   :  { %1304 = vmatpush3.msra.mxu0 %v1091_v52 }
 0x245   :  { %1305 = vmatprep.subr.mxu0 %v1106_v0 }
 0x246   :  { %1306 = vmatpush3.msra.mxu0 %v1090_v20 }
 0x247   :  { %1307 = vmatprep.subr.mxu0 %v1105_v45 }
 0x248   :  { %1308 = vmatpush3.msra.mxu0 %v1089_v33 }
 0x249   :  { %1309 = vmatprep.subr.mxu0 %v1104_v54 }
 0x24a   :  { %1310 = vmatpush3.msra.mxu0 %v1088_v12 }
 0x24b   :  { %1193 = vmatmul.mubr.f32.vlgmr.msra.gmra.mxu0 %v1120_v49 }
 0x30b   :  { %v1311_v44 = vpop.f32.mrf.mxu0 }
 0x30d   :  { %v1312_v53 = vpop.f32.mrf.mxu0 }
 0x30e   :  { %v1313_v55 = vadd.f32 %v1312_v53, %v1311_v44 }
 0x310   :  { %v1195_v6 = vadd.f32 %v1313_v55, %v1126_v59 }
 0x312   :  { %1198 = vst [vmem:[#allocation2] sm:$0xff] %v1195_v6 }
 0x313   :  { %1446 = shalt.err (!%p1443_p4)
}
 0x314   :  { %1208 = dma.vmem_to_hbm [thread:$0]  %s1206_s17, 128, %s2287_s7, [#allocation3]  }
 0x315   :  { %1455 = dma.done.wait [#allocation3], 128  }
 0x316   :  { %1456 = vsyncadd [#allocation3], 4294967168 }
 0x317   :  { %1212 = vsyncpa [#allocation3], 1 }

</bundles_post_ra>
